<compile_context>
chip_gen: v6e
topology: v6e:2x2x1
jax: 0.10.0
libtpu: 0.0.40
codegen_flags: <defaults>
</compile_context>

<pallas_src>
import jax
import jax.numpy as jnp
from jax.experimental import pallas as pl
from jax.experimental.pallas import tpu as pltpu


def _cdiv(a, b):
    return (a + b - 1) // b


def _round_up(n, m):
    return ((n + m - 1) // m) * m


def _num_tensorcores_per_chip():
    """2 on v7x (megacore via dimension_semantics), else 1.  Best-effort."""
    try:
        kind = jax.devices()[0].device_kind.lower()
    except Exception:
        return 1
    return 2 if "v7" in kind else 1


def _cpm_kernel(x_ref, w1_ref, b1_ref, w2_ref, b2_ref, a_ref, p_ref):
    mm_dtype = w1_ref.dtype                       # matmul operand dtype
    x = x_ref[...].astype(mm_dtype)               # (tm, Cin); no-op if pre-cast

    # Layer 1: x @ W1 + b1, ReLU.  MXU matmul with f32 accumulation.
    z1 = jnp.dot(x, w1_ref[...], preferred_element_type=jnp.float32)
    a = jnp.maximum(z1 + b1_ref[...], 0.0)        # f32 bias + ReLU (VPU)
    a_ref[...] = a.astype(a_ref.dtype)

    # Layer 2: A @ W2 + b2, sigmoid.
    z2 = jnp.dot(a.astype(mm_dtype), w2_ref[...],
                 preferred_element_type=jnp.float32)
    p_ref[...] = jax.nn.sigmoid(z2 + b2_ref[...]).astype(p_ref.dtype)


def _cpm_kernel_no_a(x_ref, w1_ref, b1_ref, w2_ref, b2_ref, p_ref):
    mm_dtype = w1_ref.dtype
    x = x_ref[...].astype(mm_dtype)
    z1 = jnp.dot(x, w1_ref[...], preferred_element_type=jnp.float32)
    a = jnp.maximum(z1 + b1_ref[...], 0.0)
    z2 = jnp.dot(a.astype(mm_dtype), w2_ref[...],
                 preferred_element_type=jnp.float32)
    p_ref[...] = jax.nn.sigmoid(z2 + b2_ref[...]).astype(p_ref.dtype)


def cpm_prepare_params(w1, b1, w2, b2, matmul_dtype=jnp.bfloat16):
    """One-time weight prep (hoisted out of the per-call path).

    w1: (Cin, H), b1: (H,), w2: (H, C), b2: (C,)
    Weights are cast to the MXU operand dtype; biases stay f32 (the VPU/EUP
    path is f32 on all generations).
    """
    return (
        w1.astype(matmul_dtype),
        b1.astype(jnp.float32).reshape(1, -1),
        w2.astype(matmul_dtype),
        b2.astype(jnp.float32).reshape(1, -1),
    )


def cpm_forward(x, params, *, out_dtype=None, return_a=True,
                tm_max=1024, min_grid_steps=None):
    """Fused CPM forward:  A = relu(x @ W1 + b1),  P = sigmoid(A @ W2 + b2).

    x:      (B, Cin)
    params: output of cpm_prepare_params
    Returns (A_L (B, H), P_L (B, C)) if return_a else P_L (B, C).
    """
    w1, b1, w2, b2 = params
    B, Cin = x.shape
    H = w1.shape[1]
    C = w2.shape[1]
    out_dtype = x.dtype if out_dtype is None else out_dtype
    if min_grid_steps is None:
        min_grid_steps = _num_tensorcores_per_chip()

    # Batch tiling: few, large, balanced tiles (per-step pipeline overhead is
    # ~0.35 us, comparable to the DMA time at these sizes).  16-row alignment
    # keeps bf16 sublane packing clean on every chip.
    row_align = 16
    steps = max(min_grid_steps, _cdiv(B, tm_max))
    tm = min(_round_up(_cdiv(B, steps), row_align), _round_up(B, row_align))
    Bp = _round_up(B, tm)
    grid = (Bp // tm,)

    # Fuse the batch zero-pad with the bf16 cast; skip the copy when aligned.
    if Bp == B:
        xp = x
    else:
        xp = jnp.zeros((Bp, Cin), w1.dtype).at[:B].set(x.astype(w1.dtype))

    out_itemsize = jnp.dtype(out_dtype).itemsize
    bytes_out = B * C * out_itemsize + (B * H * out_itemsize if return_a else 0)
    bytes_in = (xp.size * xp.dtype.itemsize + w1.size * w1.dtype.itemsize
                + b1.size * 4 + w2.size * w2.dtype.itemsize + b2.size * 4)
    cost = pl.CostEstimate(
        flops=2 * B * (Cin * H + H * C),
        transcendentals=B * C,                     # sigmoid
        bytes_accessed=int(bytes_in + bytes_out),
    )

    in_specs = [
        pl.BlockSpec((tm, Cin), lambda i: (i, 0)),   # x batch tile
        pl.BlockSpec((Cin, H), lambda i: (0, 0)),    # W1 (resident, unpadded)
        pl.BlockSpec((1, H), lambda i: (0, 0)),      # b1 (resident)
        pl.BlockSpec((H, C), lambda i: (0, 0)),      # W2 (resident, unpadded)
        pl.BlockSpec((1, C), lambda i: (0, 0)),      # b2 (resident)
    ]

    if return_a:
        kernel = _cpm_kernel
        out_shapes = (
            jax.ShapeDtypeStruct((Bp, H), out_dtype),   # A_L
            jax.ShapeDtypeStruct((Bp, C), out_dtype),   # P_L
        )
        out_specs = [
            pl.BlockSpec((tm, H), lambda i: (i, 0)),    # full last dim -> no pad
            pl.BlockSpec((tm, C), lambda i: (i, 0)),
        ]
    else:
        kernel = _cpm_kernel_no_a
        out_shapes = jax.ShapeDtypeStruct((Bp, C), out_dtype)
        out_specs = pl.BlockSpec((tm, C), lambda i: (i, 0))

    res = pl.pallas_call(
        kernel,
        out_shape=out_shapes,
        grid_spec=pltpu.PrefetchScalarGridSpec(
            num_scalar_prefetch=0,
            grid=grid,
            in_specs=in_specs,
            out_specs=out_specs,
        ),
        compiler_params=pltpu.CompilerParams(
            dimension_semantics=("parallel",),          # megacore split on v7x
        ),
        cost_estimate=cost,
    )(xp, w1, b1, w2, b2)

    if return_a:
        a_pad, p_pad = res
        return a_pad[:B], p_pad[:B]
    return res[:B]


def cpm_reference(x, w1, b1, w2, b2):
    a = jnp.maximum(x @ w1 + b1, 0.0)
    p = jax.nn.sigmoid(a @ w2 + b2)
    return a, p


if __name__ == "__main__":
    # Small shapes implied by CPM's forward: x is (batch, in_channel).
    batch, in_channel, hidden_channel, num_classes = 16, 32, 64, 16

    key = jax.random.PRNGKey(0)
    k_x, k_w1, k_w2, k_x2 = jax.random.split(key, 4)

    x = jax.random.normal(k_x, (batch, in_channel), dtype=jnp.float32)
    w1 = jax.random.normal(k_w1, (in_channel, hidden_channel), dtype=jnp.float32) * (
        (2.0 / (in_channel + hidden_channel)) ** 0.5
    )
    b1 = jnp.zeros((hidden_channel,), dtype=jnp.float32)
    w2 = jax.random.normal(k_w2, (hidden_channel, num_classes), dtype=jnp.float32) * (
        (2.0 / (hidden_channel + num_classes)) ** 0.5
    )
    b2 = jnp.zeros((num_classes,), dtype=jnp.float32)

    a_ref, p_ref = cpm_reference(x, w1, b1, w2, b2)

    # Prepare (cast) weights ONCE; reused across all forward calls.
    params_bf16 = cpm_prepare_params(w1, b1, w2, b2)               # bf16 MXU path
    params_f32 = cpm_prepare_params(w1, b1, w2, b2, jnp.float32)   # parity path

    # --- small batch: single grid step, unpadded lane dims ---
    a_l, p_l = cpm_forward(x, params_bf16)
    jax.block_until_ready((a_l, p_l))
    assert a_l.shape == (batch, hidden_channel)
    assert p_l.shape == (batch, num_classes)
    # bf16 MXU operands with f32 accumulation -> ~1e-3-level error vs f32 ref.
    assert jnp.allclose(a_l, a_ref, atol=3e-2, rtol=3e-2)
    assert jnp.allclose(p_l, p_ref, atol=2e-2, rtol=2e-2)

    # --- larger non-aligned batch: tail-balanced tiling (608-row step(s)) ---
    big_batch = 600
    xb = jax.random.normal(k_x2, (big_batch, in_channel), dtype=jnp.float32)
    a_b, p_b = cpm_forward(xb, params_bf16)
    jax.block_until_ready((a_b, p_b))
    a_bref, p_bref = cpm_reference(xb, w1, b1, w2, b2)
    assert a_b.shape == (big_batch, hidden_channel)
    assert p_b.shape == (big_batch, num_classes)
    assert jnp.allclose(a_b, a_bref, atol=3e-2, rtol=3e-2)
    assert jnp.allclose(p_b, p_bref, atol=2e-2, rtol=2e-2)

    # --- f32 strict-parity path, P_L only (A_L writeback skipped) ---
    p_only = cpm_forward(x, params_f32, return_a=False)
    jax.block_until_ready(p_only)
    assert p_only.shape == (batch, num_classes)
    assert jnp.allclose(p_only, p_ref, atol=2e-2, rtol=2e-2)

    # --- bf16 output option (halves HBM writeback if downstream accepts it) ---
    a_h, p_h = cpm_forward(x, params_bf16, out_dtype=jnp.bfloat16)
    jax.block_until_ready((a_h, p_h))
    assert a_h.dtype == jnp.bfloat16 and p_h.dtype == jnp.bfloat16
    assert jnp.allclose(a_h.astype(jnp.float32), a_ref, atol=5e-2, rtol=5e-2)
    assert jnp.allclose(p_h.astype(jnp.float32), p_ref, atol=3e-2, rtol=3e-2)

    print("KERNEL_OK")
</pallas_src>

<mosaic_0001>
module attributes {stable_mosaic.version = 11 : i64} {
  func.func @_cpm_kernel(%arg0: i32, %arg1: memref<16x32xf32, #tpu.memory_space<vmem>>, %arg2: memref<32x64xbf16, #tpu.memory_space<vmem>>, %arg3: memref<1x64xf32, #tpu.memory_space<vmem>>, %arg4: memref<64x16xbf16, #tpu.memory_space<vmem>>, %arg5: memref<1x16xf32, #tpu.memory_space<vmem>>, %arg6: memref<16x64xf32, #tpu.memory_space<vmem>>, %arg7: memref<16x16xf32, #tpu.memory_space<vmem>>) attributes {dimension_semantics = [#tpu.dimension_semantics<parallel>], iteration_bounds = array<i64: 1>, scalar_prefetch = 0 : i64, scratch_operands = 0 : i64, tpu.core_type = #tpu.core_type<tc>, window_params = [{transform_indices = @transform_0, window_bounds = array<i64: 16, 32>}, {pipeline_mode = #tpu.pipeline_mode<synchronous>, transform_indices = @transform_1, window_bounds = array<i64: 32, 64>}, {pipeline_mode = #tpu.pipeline_mode<synchronous>, transform_indices = @transform_2, window_bounds = array<i64: 1, 64>}, {pipeline_mode = #tpu.pipeline_mode<synchronous>, transform_indices = @transform_3, window_bounds = array<i64: 64, 16>}, {pipeline_mode = #tpu.pipeline_mode<synchronous>, transform_indices = @transform_4, window_bounds = array<i64: 1, 16>}, {transform_indices = @transform_5, window_bounds = array<i64: 16, 64>}, {transform_indices = @transform_6, window_bounds = array<i64: 16, 16>}]} {
    %c0 = arith.constant 0 : index
    %c0_0 = arith.constant 0 : index
    %0 = vector.load %arg1[%c0, %c0_0] : memref<16x32xf32, #tpu.memory_space<vmem>>, vector<16x32xf32>
    %1 = arith.truncf %0 : vector<16x32xf32> to vector<16x32xbf16>
    %c0_1 = arith.constant 0 : index
    %c0_2 = arith.constant 0 : index
    %2 = vector.load %arg2[%c0_1, %c0_2] : memref<32x64xbf16, #tpu.memory_space<vmem>>, vector<32x64xbf16>
    %cst = arith.constant dense<0.000000e+00> : vector<16x64xf32>
    %3 = tpu.matmul %1, %2, %cst {dimension_numbers = #tpu.dot_dimension_numbers<[1], [0], [0], [1], [0, 0, 1, 1], [], []>} : vector<16x32xbf16>, vector<32x64xbf16>, vector<16x64xf32> -> vector<16x64xf32>
    %c0_3 = arith.constant 0 : index
    %c0_4 = arith.constant 0 : index
    %4 = vector.load %arg3[%c0_3, %c0_4] : memref<1x64xf32, #tpu.memory_space<vmem>>, vector<1x64xf32>
    %5 = vector.broadcast %4 : vector<1x64xf32> to vector<16x64xf32>
    %6 = arith.addf %3, %5 : vector<16x64xf32>
    %cst_5 = arith.constant 0.000000e+00 : f32
    %7 = vector.broadcast %cst_5 : f32 to vector<16x64xf32>
    %8 = arith.maximumf %6, %7 : vector<16x64xf32>
    %c0_6 = arith.constant 0 : index
    %c0_7 = arith.constant 0 : index
    %9 = vector.load %arg6[%c0_6, %c0_7] : memref<16x64xf32, #tpu.memory_space<vmem>>, vector<16x64xf32>
    tpu.vector_store %arg6[%c0_6, %c0_7], %8 {strides = array<i32>} : memref<16x64xf32, #tpu.memory_space<vmem>>, vector<16x64xf32>,
    %10 = arith.truncf %8 : vector<16x64xf32> to vector<16x64xbf16>
    %c0_8 = arith.constant 0 : index
    %c0_9 = arith.constant 0 : index
    %11 = vector.load %arg4[%c0_8, %c0_9] : memref<64x16xbf16, #tpu.memory_space<vmem>>, vector<64x16xbf16>
    %cst_10 = arith.constant dense<0.000000e+00> : vector<16x16xf32>
    %12 = tpu.matmul %10, %11, %cst_10 {dimension_numbers = #tpu.dot_dimension_numbers<[1], [0], [0], [1], [0, 0, 1, 1], [], []>} : vector<16x64xbf16>, vector<64x16xbf16>, vector<16x16xf32> -> vector<16x16xf32>
    %c0_11 = arith.constant 0 : index
    %c0_12 = arith.constant 0 : index
    %13 = vector.load %arg5[%c0_11, %c0_12] : memref<1x16xf32, #tpu.memory_space<vmem>>, vector<1x16xf32>
    %14 = vector.broadcast %13 : vector<1x16xf32> to vector<16x16xf32>
    %15 = arith.addf %12, %14 : vector<16x16xf32>
    %16 = arith.negf %15 : vector<16x16xf32>
    %17 = math.exp %16 : vector<16x16xf32>
    %cst_13 = arith.constant 1.000000e+00 : f32
    %18 = vector.broadcast %cst_13 : f32 to vector<16x16xf32>
    %19 = arith.addf %18, %17 : vector<16x16xf32>
    %20 = arith.divf %18, %19 : vector<16x16xf32>
    %c0_14 = arith.constant 0 : index
    %c0_15 = arith.constant 0 : index
    %21 = vector.load %arg7[%c0_14, %c0_15] : memref<16x16xf32, #tpu.memory_space<vmem>>, vector<16x16xf32>
    tpu.vector_store %arg7[%c0_14, %c0_15], %20 {strides = array<i32>} : memref<16x16xf32, #tpu.memory_space<vmem>>, vector<16x16xf32>,
    return
  }
  func.func @transform_0(%arg0: i32) -> (i32, i32) {
    %c0_i32 = arith.constant 0 : i32
    %c0_i32_0 = arith.constant 0 : i32
    return %arg0, %c0_i32 : i32, i32
  }
  func.func @transform_1(%arg0: i32) -> (i32, i32) {
    %c0_i32 = arith.constant 0 : i32
    %c0_i32_0 = arith.constant 0 : i32
    %c0_i32_1 = arith.constant 0 : i32
    return %c0_i32, %c0_i32_0 : i32, i32
  }
  func.func @transform_2(%arg0: i32) -> (i32, i32) {
    %c0_i32 = arith.constant 0 : i32
    %c0_i32_0 = arith.constant 0 : i32
    %c0_i32_1 = arith.constant 0 : i32
    return %c0_i32, %c0_i32_0 : i32, i32
  }
  func.func @transform_3(%arg0: i32) -> (i32, i32) {
    %c0_i32 = arith.constant 0 : i32
    %c0_i32_0 = arith.constant 0 : i32
    %c0_i32_1 = arith.constant 0 : i32
    return %c0_i32, %c0_i32_0 : i32, i32
  }
  func.func @transform_4(%arg0: i32) -> (i32, i32) {
    %c0_i32 = arith.constant 0 : i32
    %c0_i32_0 = arith.constant 0 : i32
    %c0_i32_1 = arith.constant 0 : i32
    return %c0_i32, %c0_i32_0 : i32, i32
  }
  func.func @transform_5(%arg0: i32) -> (i32, i32) {
    %c0_i32 = arith.constant 0 : i32
    %c0_i32_0 = arith.constant 0 : i32
    return %arg0, %c0_i32 : i32, i32
  }
  func.func @transform_6(%arg0: i32) -> (i32, i32) {
    %c0_i32 = arith.constant 0 : i32
    %c0_i32_0 = arith.constant 0 : i32
    return %arg0, %c0_i32 : i32, i32
  }
}

</mosaic_0001>

<bundles_post_ra>
// kernel: tpu_custom_call.1
= control target key start
LH: loop header
LB: loop body
LE: loop exit
PB: predicated region body
PF: predicated region fallthrough
CT: control target
= control target key end

     0   :  { %12 = vsyncpa [#allocation3], 0  ;;  %v336_v1 = vmov 0.0   ;;  %vm337_vm0 = vmmov 0   ;;  %vm51_vm1 = vcmask 261120   ;;  %s419_s0 = inlined_call_operand.vmem [shape: f32[16,32], index: 0, kind: input, shape index: {}]   ;;  %s420_s1 = inlined_call_operand.vmem [shape: bf16[32,64], index: 1, kind: input, shape index: {}]   ;;  %s421_s2 = inlined_call_operand.vmem [shape: f32[1,64], index: 2, kind: input, shape index: {}]   ;;  %s422_s3 = inlined_call_operand.vmem [shape: bf16[64,16], index: 3, kind: input, shape index: {}]   ;;  %s423_s4 = inlined_call_operand.vmem [shape: f32[1,16], index: 4, kind: input, shape index: {}]   ;;  %s424_s5 = inlined_call_operand.hbm [shape: f32[16,64], index: 5, kind: output, shape index: {0}]   ;;  %s425_s6 = inlined_call_operand.hbm [shape: f32[16,16], index: 6, kind: output, shape index: {1}]  }
   0x1   :  { %v278_v0 = vld [vmem:[%s420_s1 + $0x8] sm:$0xff]   ;;  %252 = vmatprep.subr.bf16.mxu0 %v336_v1  ;;  %v279_v2 = vld [vmem:[%s420_s1] sm:$0xff]   ;;  %260 = vmatprep.subr.bf16.mxu1 %v336_v1  ;;  %v280_v5 = vld [vmem:[%s422_s3 + $0x18] sm:$0xff]  }
   0x2   :  { %253 = vmatpush3.bf16.msra.mxu0 %v278_v0  ;;  %256 = vmatprep.mubr.msk.bf16.mxu0 %vm337_vm0, %v336_v1  ;;  %v25_v3 = vld [vmem:[%s419_s0] sm:$0xff]  ;;  %v26_v4 = vld [vmem:[%s419_s0 + $0x8] sm:$0xff] }
   0x3   :  { %254 = vmatprep.subr.bf16.mxu0 %v336_v1  ;;  %268 = vmatprep.mubr.msk.bf16.mxu1 %vm337_vm0, %v336_v1  ;;  %v27_v6 = vpack.c.bf16 %v26_v4, %v25_v3 }
   0x4   :  { %261 = vmatpush3.bf16.msra.mxu1 %v280_v5 }
   0x5   :  { %262 = vmatprep.subr.bf16.mxu1 %v336_v1 }
   0x6   :  { %255 = vmatpush3.bf16.msra.mxu0 %v279_v2 }
   0x7   :  { %13 = vsyncpa [#allocation5], 0  ;;  %v281_v7 = vld [vmem:[%s422_s3 + $0x10] sm:$0xff]   ;;  %v282_v8 = vld [vmem:[%s422_s3 + $0x8] sm:$0xff]   ;;  %vm98_vm2 = vcmask 523264   ;;  %s338_s13 = smov [#allocation2]  }
   0x8   :  { %263 = vmatpush3.bf16.msra.mxu1 %v281_v7  ;;  %v283_v9 = vld [vmem:[%s422_s3] sm:$0xff]   ;;  %s205_s3 = sshll.u32 %s338_s13, 4  ;;  %s206_s3 = int_to_ptr.vmem [resolvable:$true] %s205_s3 }
   0x9   :  { %257 = vmatmul.mubr.msk.bf16.vlgmr.msra.gmra.mxu0 %vm51_vm1, %v27_v6  ;;  %264 = vmatprep.subr.bf16.mxu1 %v336_v1  ;;  %v232_v10 = vld [vmem:[%s421_s2] ss:$0 sm:$0xff]  ;;  %s292_s14 = scalar_lea.vmem %s206_s3, 256  ;;  %p297_p1 = scmp.lt.s32.totalorder %s206_s3, %s206_s3 }
   0xa   :  { %p293_p0 = scmp.ne.s32.totalorder %s206_s3, %s292_s14  ;;  %p298_p2 = scmp.lt.s32.totalorder %s292_s14, %s292_s14 }
   0xc   :  { %265 = vmatpush3.bf16.msra.mxu1 %v282_v8  ;;  %p299_p3 = por %p298_p2, %p297_p1 }
   0xd   :  { %266 = vmatprep.subr.bf16.mxu1 %v336_v1 }
   0xe   :  { %p300_p4 = pnand %p299_p3, %p293_p0 }
  0x10   :  { %267 = vmatpush3.bf16.msra.mxu1 %v283_v9 }
  0xc9   :  { %v89_v11 = vpop.f32.mrf.mxu0 }
  0xca   :  { %v90_v12 = vadd.f32 %v232_v10, %v89_v11 }
  0xcb   :  { %v258_v13 = vpop.f32.mrf.mxu0 }
  0xcc   :  { %v96_v14 = vmax.f32 %v90_v12, 0.0 }
  0xcd   :  { %v92_v15 = vpop.f32.mrf.mxu0 }
  0xce   :  { %99 = vst.msk [vmem:[#allocation2] sm:$0xff] %vm98_vm2, %v96_v14  ;;  %v93_v16 = vadd.f32 %v232_v10, %v92_v15 }
  0xcf   :  { %v259_v17 = vpop.f32.mrf.mxu0 }
  0xd0   :  { %v97_v18 = vmax.f32 %v93_v16, 0.0 }
  0xd2   :  { %100 = vst.msk [vmem:[#allocation2 + $0x8] sm:$0xff] %vm98_vm2, %v97_v18  ;;  %v101_v19 = vpack.c.bf16 %v97_v18, %v96_v14 }
  0xd4   :  { %269 = vmatmul.mubr.msk.bf16.vlgmr.msra.gmra.mxu1 %vm98_vm2, %v101_v19 }
  0xd5   :  { %303 = shalt.err (!%p300_p4)
}
  0xd6   :  { %s339_s2 = smov 128   ;;  %s340_s15 = smov 8   ;;  %v236_v20 = vld [vmem:[%s423_s4] ss:$0 sm:$0xff]  ;;  %vm197_vm3 = vcmask 130048  }
  0xd7   :  { %211 = dma.vmem_to_hbm [thread:$0]  %s206_s3, 256, %s424_s5, [#allocation3], %s339_s2, %s339_s2, %s340_s15  }
  0xd8   :  { %s341_s5 = smov [#allocation4]  }
  0xd9   :  { %s217_s4 = sshll.u32 %s341_s5, 4  ;;  %s218_s4 = int_to_ptr.vmem [resolvable:$true] %s217_s4 }
  0xda   :  { %s312_s20 = scalar_lea.vmem %s218_s4, 256  ;;  %p317_p6 = scmp.lt.s32.totalorder %s218_s4, %s218_s4 }
  0xdb   :  { %p313_p5 = scmp.ne.s32.totalorder %s218_s4, %s312_s20  ;;  %p318_p7 = scmp.lt.s32.totalorder %s312_s20, %s312_s20 }
  0xdd   :  { %p319_p8 = por %p318_p7, %p317_p6 }
  0xdf   :  { %p320_p9 = pnand %p319_p8, %p313_p5 }
 0x194   :  { %v178_v21 = vpop.f32.mrf.mxu1 }
 0x195   :  { %v179_v22 = vadd.f32 %v236_v20, %v178_v21 }
 0x196   :  { %v270_v23 = vpop.f32.mrf.mxu1 }
 0x197   :  { %v242_v24 = vmul.f32 -1.442695, %v179_v22 }
 0x198   :  { %v181_v25 = vpop.f32.mrf.mxu1 }
 0x199   :  { %284 = vpow2.f32 %v242_v24  ;;  %v182_v26 = vadd.f32 %v236_v20, %v181_v25 }
 0x19a   :  { %v271_v27 = vpop.f32.mrf.mxu1 }
 0x19b   :  { %v243_v28 = vmul.f32 -1.442695, %v182_v26 }
 0x19d   :  { %286 = vpow2.f32 %v243_v28 }
 0x1a6   :  { %v285_v29 = vpop.eup %284 }
 0x1a7   :  { %v191_v30 = vadd.f32 1.0, %v285_v29 }
 0x1a9   :  { %288 = vrcp.f32 %v191_v30 }
 0x1aa   :  { %v287_v31 = vpop.eup %286 }
 0x1ab   :  { %v192_v32 = vadd.f32 1.0, %v287_v31 }
 0x1ad   :  { %290 = vrcp.f32 %v192_v32 }
 0x1b6   :  { %v289_v33 = vpop.eup %288 }
 0x1b7   :  { %198 = vst.msk [vmem:[#allocation4] sm:$0xff] %vm197_vm3, %v289_v33 }
 0x1ba   :  { %v291_v34 = vpop.eup %290 }
 0x1bb   :  { %199 = vst.msk [vmem:[#allocation4 + $0x8] sm:$0xff] %vm197_vm3, %v291_v34 }
 0x1bc   :  { %323 = shalt.err (!%p320_p9)
}
 0x1bd   :  { %223 = dma.vmem_to_hbm [thread:$0]  %s218_s4, 256, %s425_s6, [#allocation5], %s339_s2, %s339_s2, %s340_s15  }
 0x1be   :  { %332 = dma.done.wait [#allocation3], 256  }
 0x1bf   :  { %333 = vsyncadd [#allocation3], 4294967040 }
 0x1c0   :  { %334 = dma.done.wait [#allocation5], 256  }
 0x1c1   :  { %335 = vsyncadd [#allocation5], 4294967040 }
 0x1c2   :  { %230 = vsyncpa [#allocation3], 1 }
 0x1c3   :  { %231 = vsyncpa [#allocation5], 1 }

</bundles_post_ra>
